<compile_context>
chip_gen: v5e
topology: v5e:2x2
jax: 0.10.0
libtpu: 0.0.40
codegen_flags: <defaults>
</compile_context>

<pallas_src>
import functools

import jax
import jax.numpy as jnp
from jax.experimental import pallas as pl
from jax.experimental.pallas import tpu as pltpu


# --------------------------------------------------------------------------------------
# Kernel
# --------------------------------------------------------------------------------------
def _conv_bn_relu_kernel(x_ref, w_ref, b_ref, o_ref, *,
                         kh, kw, cpt, stride, dil_h, dil_w, rc, ow):
    # x_ref: (HP, WK, CK)          zero-padded NHWC image for this batch element (bf16).
    #                              CK == cpt for the per-tap path, CK == kw*cp (and kw==1
    #                              here) for the kw-interleaved "fat K" path.
    # w_ref: (KH*KW*CP, OCT)       BN-scale-folded weights, K rows ordered (i, j, ch).
    # b_ref: (1, OCT)              folded BN bias (f32).
    # o_ref: (TH, OW, OCT)         output block (lane-dense OCT).
    octile = o_ref.shape[-1]
    th = o_ref.shape[0]
    nchunks = th // rc
    row0 = pl.program_id(1) * (th * stride)

    def row_win(base):
        return pl.ds(base, rc) if stride == 1 else pl.ds(base, rc, stride)

    def col_win(j):
        start = j * dil_w
        return pl.ds(start, ow) if stride == 1 else pl.ds(start, ow, stride)

    bias = b_ref[...]                                  # (1, OCT) f32, hoisted

    for c in range(nchunks):                           # small static unroll (<= ~4)
        base = row0 + c * (rc * stride)
        acc = None                                     # functional (vreg-resident) acc
        for i in range(kh):
            for j in range(kw):
                tap = x_ref[row_win(base + i * dil_h), col_win(j), :]
                tap = tap.reshape(rc * ow, cpt)        # ow % 8 == 0 -> layout-free
                t = i * kw + j
                contrib = jnp.dot(tap, w_ref[t * cpt:(t + 1) * cpt, :],
                                  preferred_element_type=jnp.float32)
                acc = contrib if acc is None else acc + contrib
        y = jnp.maximum(acc + bias, 0.0)               # bias + ReLU epilogue (f32)
        o_ref[pl.ds(c * rc, rc), :, :] = y.reshape(rc, ow, octile).astype(o_ref.dtype)


# --------------------------------------------------------------------------------------
# Wrapper helpers
# --------------------------------------------------------------------------------------
def _round_up(a, b):
    return (a + b - 1) // b * b


def _pick_oc_tile(ocp):
    # Largest 128-multiple <= 512 that divides OCP (keeps the weight block VMEM-small).
    if ocp <= 512:
        return ocp
    for t in (512, 384, 256, 128):
        if ocp % t == 0:
            return t
    return 128


def _fold_bn(weight, gamma, beta, running_mean, running_var, eps):
    scale = gamma / jnp.sqrt(running_var + eps)           # (OC,)
    w_folded = weight * scale[:, None, None, None]        # (OC, C, KH, KW)
    bias = beta - running_mean * scale                    # (OC,)
    return w_folded, bias


def _vmem_limit_bytes():
    cap = None
    try:
        cap = getattr(pltpu.get_tpu_info(), "vmem_capacity_bytes", None)
    except Exception:
        cap = None
    if not cap:
        cap = 64 * 1024 * 1024                 # conservative default (v7x per-core)
    if cap >= 100 * 1024 * 1024:               # v5e / v6e (128 MiB): plenty of headroom
        return min(112 * 1024 * 1024, (cap * 3) // 4)
    return (cap * 3) // 5                      # ~38 MiB on a 64 MiB v7x core


# --------------------------------------------------------------------------------------
# Public ops
# --------------------------------------------------------------------------------------
@functools.partial(jax.jit, static_argnames=("stride", "padding", "dilation", "eps",
                                             "out_dtype", "fatten"))
def basic_conv2d_nhwc(x, weight, gamma, beta, running_mean, running_var, *,
                      stride=1, padding=0, dilation=1, eps=1e-5,
                      out_dtype=jnp.bfloat16, fatten=None):
    """Fused Conv2d(bias=False) + BatchNorm2d(inference) + ReLU.

    x: (N, C, H, W).  Returns NHWC (N, OH, OW, OC) in `out_dtype` (bf16 by default) —
    the performance-oriented layout; use `basic_conv2d` for module-parity NCHW output.
    """
    n, c, h, w = x.shape
    oc, _, kh, kw = weight.shape

    oh = (h + 2 * padding - dilation * (kh - 1) - 1) // stride + 1
    ow = (w + 2 * padding - dilation * (kw - 1) - 1) // stride + 1

    # --- tile geometry -----------------------------------------------------------
    cp = _round_up(c, 8)                   # sublane-friendly input channels
    ocp = _round_up(oc, 128)               # lane-dense output channels
    oc_tile = _pick_oc_tile(ocp)           # OC grid tiling (VMEM + v7x parallelism)
    ow_pad = _round_up(ow, 8)              # 8-aligned M axis -> free reshapes

    # M sub-chunk such that the f32 accumulator stays ~32 vregs (128 KiB), and
    # ~1024 output positions per grid step to amortize the ~0.35 us step overhead.
    chunk_target = max(8, 32768 // oc_tile)
    rc = max(1, min(oh, chunk_target // ow_pad))
    nchunks = max(1, min(pl.cdiv(oh, rc), max(1, 1024 // (rc * ow_pad))))
    th = rc * nchunks
    oh_pad = pl.cdiv(oh, th) * th

    rows_needed = stride * (oh_pad - 1) + dilation * (kh - 1) + 1
    cols_needed = stride * (ow_pad - 1) + dilation * (kw - 1) + 1
    pad_bottom = padding + max(0, rows_needed - (h + 2 * padding))
    pad_right = padding + max(0, cols_needed - (w + 2 * padding))
    hp = h + padding + pad_bottom
    wf = stride * (ow_pad - 1) + 1         # width of the kw-interleaved image

    if fatten is None:
        # Fatten K for small-C layers: fold the kw taps into the contraction dim so
        # each MXU pass has K = kw*cp instead of cp.  Guard the (kw x) image blow-up.
        fatten = (cp < 256) and (kw > 1) and (hp * wf * kw * cp * 2 <= 12 * 1024 * 1024)

    # --- data prep (cheap XLA layout passes; no full KH*KW im2col materialization) --
    x_nhwc = jnp.transpose(x, (0, 2, 3, 1))
    x_nhwc = jnp.pad(x_nhwc, ((0, 0), (padding, pad_bottom),
                              (padding, pad_right), (0, cp - c)))
    x_nhwc = x_nhwc.astype(jnp.bfloat16)   # MXU-native; f32 accumulation in-kernel

    if fatten:
        # kw-interleave the channel axis: x_k[n, h, c0, j*cp + ch] = x_pad[n, h, c0 + j*dil, ch]
        x_k = jnp.concatenate(
            [x_nhwc[:, :, j * dilation:j * dilation + wf, :] for j in range(kw)],
            axis=-1)
        kw_k, cpt, dil_w = 1, kw * cp, 1
    else:
        x_k = x_nhwc
        kw_k, cpt, dil_w = kw, cp, dilation
    hp_k, wk, ck = x_k.shape[1], x_k.shape[2], x_k.shape[3]

    w_folded, bias = _fold_bn(weight, gamma, beta, running_mean, running_var, eps)
    # (OC,C,KH,KW) -> (KH,KW,C,OC) -> pad -> (KH*KW*CP, OCP).  K-row ordering (i, j, ch)
    # matches both the per-tap and the kw-interleaved patch layouts.
    w_mat = jnp.transpose(w_folded, (2, 3, 1, 0))
    w_mat = jnp.pad(w_mat, ((0, 0), (0, 0), (0, cp - c), (0, ocp - oc)))
    w_mat = w_mat.reshape(kh * kw * cp, ocp).astype(jnp.bfloat16)
    bias_mat = jnp.pad(bias, (0, ocp - oc)).reshape(1, ocp).astype(jnp.float32)

    grid = (n, oh_pad // th, ocp // oc_tile)
    kernel = functools.partial(_conv_bn_relu_kernel, kh=kh, kw=kw_k, cpt=cpt,
                               stride=stride, dil_h=dilation, dil_w=dil_w,
                               rc=rc, ow=ow_pad)

    out_full = pl.pallas_call(
        kernel,
        out_shape=jax.ShapeDtypeStruct((n, oh_pad, ow_pad, ocp), out_dtype),
        grid_spec=pltpu.PrefetchScalarGridSpec(
            num_scalar_prefetch=0,
            grid=grid,
            in_specs=[
                # Full padded image of the current batch element; re-DMA'd only when b
                # changes.  (For very large images switch this to a row-strip spec.)
                pl.BlockSpec((None, hp_k, wk, ck), lambda b, r, o: (b, 0, 0, 0)),
                pl.BlockSpec((kh * kw * cp, oc_tile), lambda b, r, o: (0, o)),
                pl.BlockSpec((1, oc_tile), lambda b, r, o: (0, o)),
            ],
            out_specs=pl.BlockSpec((None, th, ow_pad, oc_tile),
                                   lambda b, r, o: (b, r, 0, o)),
        ),
        compiler_params=pltpu.CompilerParams(
            dimension_semantics=("parallel", "parallel", "parallel"),
            vmem_limit_bytes=_vmem_limit_bytes()),
    )(x_k, w_mat, bias_mat)

    return out_full[:, :oh, :ow, :oc]


def basic_conv2d(x, weight, gamma, beta, running_mean, running_var,
                 stride=1, padding=0, dilation=1, eps=1e-5, fatten=None):
    """Module-parity API: (N, OC, OH, OW) in x.dtype.  The final transpose/cast is a
    convenience layout pass; perf-minded callers should consume basic_conv2d_nhwc."""
    y = basic_conv2d_nhwc(x, weight, gamma, beta, running_mean, running_var,
                          stride=stride, padding=padding, dilation=dilation, eps=eps,
                          out_dtype=jnp.bfloat16, fatten=fatten)
    return jnp.transpose(y, (0, 3, 1, 2)).astype(x.dtype)


# --------------------------------------------------------------------------------------
# Reference + test
# --------------------------------------------------------------------------------------
def _reference_conv_bn_relu(x, w_folded, bias, stride, padding, dilation):
    y = jax.lax.conv_general_dilated(
        x, w_folded,
        window_strides=(stride, stride),
        padding=[(padding, padding), (padding, padding)],
        rhs_dilation=(dilation, dilation),
        dimension_numbers=("NCHW", "OIHW", "NCHW"),
        precision=jax.lax.Precision.HIGHEST)
    return jnp.maximum(y + bias[None, :, None, None], 0.0)


if __name__ == "__main__":
    # Small shapes consistent with the module: N=2, C_in=4, H=W=16, C_out=8, 3x3, pad=1.
    N, CIN, H, W = 2, 4, 16, 16
    COUT, KH, KW = 8, 3, 3
    STRIDE, PAD, DIL = 1, 1, 1
    EPS = 1e-5

    key = jax.random.PRNGKey(0)
    kx, kw_, kg, kb, km, kv = jax.random.split(key, 6)
    x = jax.random.normal(kx, (N, CIN, H, W), dtype=jnp.float32)
    weight = jax.random.normal(kw_, (COUT, CIN, KH, KW), dtype=jnp.float32) * 0.1
    gamma = jax.random.normal(kg, (COUT,), dtype=jnp.float32) * 0.1 + 1.0
    beta = jax.random.normal(kb, (COUT,), dtype=jnp.float32) * 0.1
    running_mean = jax.random.normal(km, (COUT,), dtype=jnp.float32) * 0.1
    running_var = jnp.abs(jax.random.normal(kv, (COUT,), dtype=jnp.float32)) * 0.1 + 1.0

    # Fat-K path (auto-selected for small C).
    out = basic_conv2d(x, weight, gamma, beta, running_mean, running_var,
                       stride=STRIDE, padding=PAD, dilation=DIL, eps=EPS)
    out = jax.block_until_ready(out)
    assert out.shape == (N, COUT, H, W), out.shape

    # Per-tap fallback path (used for large-C layers), exercised on the same problem.
    out_tap = basic_conv2d(x, weight, gamma, beta, running_mean, running_var,
                           stride=STRIDE, padding=PAD, dilation=DIL, eps=EPS,
                           fatten=False)
    out_tap = jax.block_until_ready(out_tap)
    assert out_tap.shape == (N, COUT, H, W), out_tap.shape

    w_folded, bias = _fold_bn(weight, gamma, beta, running_mean, running_var, EPS)

    # Tight check: reference with the SAME bf16 quantization of inputs / folded weights
    # (validates the fused conv + BN-fold + bias + ReLU math; only accumulation order
    # and the bf16 output rounding differ).
    x_q = x.astype(jnp.bfloat16).astype(jnp.float32)
    w_q = w_folded.astype(jnp.bfloat16).astype(jnp.float32)
    ref_q = _reference_conv_bn_relu(x_q, w_q, bias, STRIDE, PAD, DIL)
    assert jnp.allclose(out, ref_q, atol=2e-2, rtol=2e-2), "fat-K path mismatch"
    assert jnp.allclose(out_tap, ref_q, atol=2e-2, rtol=2e-2), "per-tap path mismatch"

    # Loose check: full-f32 reference, bounds the bf16 quantization error.
    ref_f32 = _reference_conv_bn_relu(x, w_folded, bias, STRIDE, PAD, DIL)
    assert jnp.allclose(out, ref_f32, atol=6e-2, rtol=6e-2), "mismatch vs f32 reference"

    print("KERNEL_OK")
</pallas_src>

<mosaic_0001>
module attributes {stable_mosaic.version = 11 : i64} {
  func.func @_conv_bn_relu_kernel(%arg0: i32, %arg1: i32, %arg2: i32, %arg3: memref<1x18x16x24xbf16, #tpu.memory_space<vmem>>, %arg4: memref<72x128xbf16, #tpu.memory_space<vmem>>, %arg5: memref<1x128xf32, #tpu.memory_space<vmem>>, %arg6: memref<1x16x16x128xbf16, #tpu.memory_space<vmem>>) attributes {dimension_semantics = [#tpu.dimension_semantics<parallel>, #tpu.dimension_semantics<parallel>, #tpu.dimension_semantics<parallel>], iteration_bounds = array<i64: 2, 1, 1>, scalar_prefetch = 0 : i64, scratch_operands = 0 : i64, tpu.core_type = #tpu.core_type<tc>, window_params = [{transform_indices = @transform_0, window_bounds = array<i64: 1, 18, 16, 24>}, {transform_indices = @transform_1, window_bounds = array<i64: 72, 128>}, {transform_indices = @transform_2, window_bounds = array<i64: 1, 128>}, {transform_indices = @transform_3, window_bounds = array<i64: 1, 16, 16, 128>}]} {
    %c16_i32 = arith.constant 16 : i32
    %0 = arith.muli %arg1, %c16_i32 : i32
    %c0 = arith.constant 0 : index
    %c0_0 = arith.constant 0 : index
    %1 = vector.load %arg5[%c0, %c0_0] : memref<1x128xf32, #tpu.memory_space<vmem>>, vector<1x128xf32>
    %c0_i32 = arith.constant 0 : i32
    %2 = arith.addi %0, %c0_i32 : i32
    %c0_i32_1 = arith.constant 0 : i32
    %3 = arith.addi %2, %c0_i32_1 : i32
    %c0_2 = arith.constant 0 : index
    %4 = arith.index_cast %3 : i32 to index
    %c0_3 = arith.constant 0 : index
    %c0_4 = arith.constant 0 : index
    %5 = vector.load %arg3[%c0_2, %4, %c0_3, %c0_4] : memref<1x18x16x24xbf16, #tpu.memory_space<vmem>>, vector<1x16x16x24xbf16>
    %6 = vector.shape_cast %5 : vector<1x16x16x24xbf16> to vector<16x16x24xbf16>
    %7 = vector.shape_cast %6 : vector<16x16x24xbf16> to vector<256x24xbf16>
    %c0_5 = arith.constant 0 : index
    %c0_6 = arith.constant 0 : index
    %8 = vector.load %arg4[%c0_5, %c0_6] : memref<72x128xbf16, #tpu.memory_space<vmem>>, vector<24x128xbf16>
    %cst = arith.constant dense<0.000000e+00> : vector<256x128xf32>
    %9 = tpu.matmul %7, %8, %cst {dimension_numbers = #tpu.dot_dimension_numbers<[1], [0], [0], [1], [0, 0, 1, 1], [], []>} : vector<256x24xbf16>, vector<24x128xbf16>, vector<256x128xf32> -> vector<256x128xf32>
    %c1_i32 = arith.constant 1 : i32
    %10 = arith.addi %2, %c1_i32 : i32
    %c0_7 = arith.constant 0 : index
    %11 = arith.index_cast %10 : i32 to index
    %c0_8 = arith.constant 0 : index
    %c0_9 = arith.constant 0 : index
    %12 = vector.load %arg3[%c0_7, %11, %c0_8, %c0_9] : memref<1x18x16x24xbf16, #tpu.memory_space<vmem>>, vector<1x16x16x24xbf16>
    %13 = vector.shape_cast %12 : vector<1x16x16x24xbf16> to vector<16x16x24xbf16>
    %14 = vector.shape_cast %13 : vector<16x16x24xbf16> to vector<256x24xbf16>
    %c24 = arith.constant 24 : index
    %c0_10 = arith.constant 0 : index
    %15 = vector.load %arg4[%c24, %c0_10] : memref<72x128xbf16, #tpu.memory_space<vmem>>, vector<24x128xbf16>
    %cst_11 = arith.constant dense<0.000000e+00> : vector<256x128xf32>
    %16 = tpu.matmul %14, %15, %cst_11 {dimension_numbers = #tpu.dot_dimension_numbers<[1], [0], [0], [1], [0, 0, 1, 1], [], []>} : vector<256x24xbf16>, vector<24x128xbf16>, vector<256x128xf32> -> vector<256x128xf32>
    %17 = arith.addf %9, %16 : vector<256x128xf32>
    %c2_i32 = arith.constant 2 : i32
    %18 = arith.addi %2, %c2_i32 : i32
    %c0_12 = arith.constant 0 : index
    %19 = arith.index_cast %18 : i32 to index
    %c0_13 = arith.constant 0 : index
    %c0_14 = arith.constant 0 : index
    %20 = vector.load %arg3[%c0_12, %19, %c0_13, %c0_14] : memref<1x18x16x24xbf16, #tpu.memory_space<vmem>>, vector<1x16x16x24xbf16>
    %21 = vector.shape_cast %20 : vector<1x16x16x24xbf16> to vector<16x16x24xbf16>
    %22 = vector.shape_cast %21 : vector<16x16x24xbf16> to vector<256x24xbf16>
    %c48 = arith.constant 48 : index
    %c0_15 = arith.constant 0 : index
    %23 = vector.load %arg4[%c48, %c0_15] : memref<72x128xbf16, #tpu.memory_space<vmem>>, vector<24x128xbf16>
    %cst_16 = arith.constant dense<0.000000e+00> : vector<256x128xf32>
    %24 = tpu.matmul %22, %23, %cst_16 {dimension_numbers = #tpu.dot_dimension_numbers<[1], [0], [0], [1], [0, 0, 1, 1], [], []>} : vector<256x24xbf16>, vector<24x128xbf16>, vector<256x128xf32> -> vector<256x128xf32>
    %25 = arith.addf %17, %24 : vector<256x128xf32>
    %26 = vector.broadcast %1 : vector<1x128xf32> to vector<256x128xf32>
    %27 = arith.addf %25, %26 : vector<256x128xf32>
    %cst_17 = arith.constant 0.000000e+00 : f32
    %28 = vector.broadcast %cst_17 : f32 to vector<256x128xf32>
    %29 = arith.maximumf %27, %28 : vector<256x128xf32>
    %30 = vector.shape_cast %29 : vector<256x128xf32> to vector<16x16x128xf32>
    %31 = arith.truncf %30 : vector<16x16x128xf32> to vector<16x16x128xbf16>
    %c0_18 = arith.constant 0 : index
    %c0_19 = arith.constant 0 : index
    %c0_20 = arith.constant 0 : index
    %c0_21 = arith.constant 0 : index
    %32 = vector.load %arg6[%c0_18, %c0_19, %c0_20, %c0_21] : memref<1x16x16x128xbf16, #tpu.memory_space<vmem>>, vector<1x16x16x128xbf16>
    %33 = vector.shape_cast %32 : vector<1x16x16x128xbf16> to vector<16x16x128xbf16>
    %34 = vector.shape_cast %31 : vector<16x16x128xbf16> to vector<1x16x16x128xbf16>
    tpu.vector_store %arg6[%c0_18, %c0_19, %c0_20, %c0_21], %34 {strides = array<i32>} : memref<1x16x16x128xbf16, #tpu.memory_space<vmem>>, vector<1x16x16x128xbf16>,
    return
  }
  func.func @transform_0(%arg0: i32, %arg1: i32, %arg2: i32) -> (i32, i32, i32, i32) {
    %c0_i32 = arith.constant 0 : i32
    %c0_i32_0 = arith.constant 0 : i32
    %c0_i32_1 = arith.constant 0 : i32
    %c0_i32_2 = arith.constant 0 : i32
    return %arg0, %c0_i32, %c0_i32_0, %c0_i32_1 : i32, i32, i32, i32
  }
  func.func @transform_1(%arg0: i32, %arg1: i32, %arg2: i32) -> (i32, i32) {
    %c0_i32 = arith.constant 0 : i32
    %c0_i32_0 = arith.constant 0 : i32
    return %c0_i32, %arg2 : i32, i32
  }
  func.func @transform_2(%arg0: i32, %arg1: i32, %arg2: i32) -> (i32, i32) {
    %c0_i32 = arith.constant 0 : i32
    %c0_i32_0 = arith.constant 0 : i32
    return %c0_i32, %arg2 : i32, i32
  }
  func.func @transform_3(%arg0: i32, %arg1: i32, %arg2: i32) -> (i32, i32, i32, i32) {
    %c0_i32 = arith.constant 0 : i32
    %c0_i32_0 = arith.constant 0 : i32
    return %arg0, %arg1, %c0_i32, %arg2 : i32, i32, i32, i32
  }
}

</mosaic_0001>

<bundles_post_ra>
// kernel: basic_conv2d_nhwc.1
= control target key start
LH: loop header
LB: loop body
LE: loop exit
PB: predicated region body
PF: predicated region fallthrough
CT: control target
= control target key end

     0   :  { %s1901_s12 = smov 0   ;;  %s1903_s13 = smov 0   ;;  %s2157_s0 = inlined_call_operand.vmem [shape: bf16[2,18,16,24], index: 0, kind: input, shape index: {}]   ;;  %s2158_s1 = inlined_call_operand.vmem [shape: bf16[72,128], index: 1, kind: input, shape index: {}]   ;;  %s2159_s2 = inlined_call_operand.vmem [shape: f32[1,128], index: 2, kind: input, shape index: {}]   ;;  %s2160_s3 = inlined_call_operand.vmem [shape: bf16[2,16,16,128], index: 3, kind: output, shape index: {}]  }
   0x1   :  { %s1905_s14 = smov 0  }
   0x2 LB: > { %s32_s15 = sadd.s32 1, %s1875_s13  ;;  %p1356_p0 = scmp.ge.s32.totalorder %s1879_s14, 1  ;;  %s1879_s14 = sphi %s1905_s14, %s13_s14   ;;  %s1875_s13 = sphi %s1903_s13, %s2162_s13   ;;  %s1871_s12 = sphi %s1901_s12, %s2161_s12  }
   0x3   : > { %p34_p1 = scmp.ge.s32.totalorder %s32_s15, 2  ;;  %p177_p2 = scmp.lt.s32.totalorder %s1879_s14, 3 }
   0x5   : > { %s2164_s15 = smov (%p34_p1, %s32_s15), 0  ;;  %p178_p3 = pnand %p1356_p0, %p177_p2 }
   0x6   : > { %p216_p4 = scmp.lt.s32.totalorder (!%p178_p3), %s1871_s12, 1 }
   0x7   : > { %181 = sbr.rel (%p178_p3) target bundleno = 352 (0x160), region = 32 }
   0xc   : > { %v321_v0 = vld [vmem:[%s2158_s1 + $0x14] sm:$0xf]  ;;  %v282_v1 = vld [vmem:[%s2158_s1 + $0x8] sm:$0xf]  ;;  %v820_v4 = vld [vmem:[%s2158_s1 + $0x20] sm:$0xf] }
   0xd   : > { %v407_v2 = vunpack.c.l.b16 %v321_v0  ;;  %v638_v3 = vunpack.c.l.b16 %v282_v1  ;;  %vm460_vm0 = vcmask 1043456   ;;  %v906_v5 = vunpack.c.l.b16 %v820_v4  ;;  %s2166_s12 = smov (!%p216_p4, %s1871_s12), 1  ;;  %v1712_v12 = vld [vmem:[%s2158_s1 + $0xc] sm:$0xff]  ;;  %v1695_v13 = vld [vmem:[%s2158_s1] sm:$0xff]  ;;  %v1729_v14 = vld [vmem:[%s2158_s1 + $0x18] sm:$0xff] }
   0xe   : > { %s1831_s22 = smul.u32 144, %s2166_s12  ;;  %vm411_vm1 = vcmask 195584   ;;  %v2022_v59 = vld [vmem:[%s2159_s2] ss:$0 sm:$0xff]  ;;  %s1678_s7 = sshll.u32 %s2166_s12, 7 }
   0xf   : > { %v409_v6 = vpack.c.b16 %v407_v2, %v407_v2  ;;  %v640_v7 = vpack.c.b16 %v638_v3, %v638_v3  ;;  %v908_v8 = vpack.c.b16 %v906_v5, %v906_v5  ;;  %s2040_s10 = scalar_lea.vmem %s2160_s3, %s1678_s7 }
  0x10   : > { %s1943_s4 = scalar_lea.vmem %s2157_s0, %s1831_s22 }
  0x11   : > { %v462_v9 = vsel %vm460_vm0, %v409_v6, 0  ;;  %v691_v10 = vsel %vm460_vm0, %v640_v7, 0  ;;  %v959_v11 = vsel %vm460_vm0, %v908_v8, 0  ;;  %v1696_v15 = vld [vmem:[%s1943_s4 + $0x8] sm:$0xff]  ;;  %v1679_v17 = vld [vmem:[%s1943_s4] sm:$0xff]  ;;  %v1713_v18 = vld [vmem:[%s1943_s4 + $0x10] sm:$0xff] }
  0x12   : > { %470 = vmatpush.bf16.msra.mxu0 %v462_v9  ;;  %1825 = vmatpush.bf16.msra.mxu3 %v462_v9  ;;  %v1708_v16 = vld [vmem:[%s1943_s4 + $0x68] sm:$0xff]  ;;  %v1697_v19 = vld [vmem:[%s1943_s4 + $0x10] sm:$0xff]  ;;  %v1714_v22 = vld [vmem:[%s1943_s4 + $0x18] sm:$0xff] }
  0x13   : > { %699 = vmatpush.bf16.msra.mxu1 %v691_v10  ;;  %967 = vmatpush.bf16.msra.mxu2 %v959_v11  ;;  %v1709_v20 = vld [vmem:[%s1943_s4 + $0x70] sm:$0xff]  ;;  %v1680_v21 = vld [vmem:[%s1943_s4 + $0x8] sm:$0xff]  ;;  %v1698_v23 = vld [vmem:[%s1943_s4 + $0x18] sm:$0xff] }
  0x14   : > { %v1710_v24 = vld [vmem:[%s1943_s4 + $0x78] sm:$0xff]  ;;  %v1681_v25 = vld [vmem:[%s1943_s4 + $0x10] sm:$0xff]  ;;  %v1715_v26 = vld [vmem:[%s1943_s4 + $0x20] sm:$0xff] }
  0x15   : > { %v1699_v27 = vld [vmem:[%s1943_s4 + $0x20] sm:$0xff]  ;;  %v1682_v29 = vld [vmem:[%s1943_s4 + $0x18] sm:$0xff]  ;;  %v1716_v30 = vld [vmem:[%s1943_s4 + $0x28] sm:$0xff] }
  0x16   : > { %471 = vmatpush.bf16.msra.mxu0 %v1712_v12  ;;  %1826 = vmatpush.bf16.msra.mxu3 %v1712_v12  ;;  %v1711_v28 = vld [vmem:[%s1943_s4 + $0x80] sm:$0xff]  ;;  %v1700_v31 = vld [vmem:[%s1943_s4 + $0x28] sm:$0xff]  ;;  %v1717_v34 = vld [vmem:[%s1943_s4 + $0x30] sm:$0xff] }
  0x17   : > { %700 = vmatpush.bf16.msra.mxu1 %v1695_v13  ;;  %968 = vmatpush.bf16.msra.mxu2 %v1729_v14  ;;  %v1691_v32 = vld [vmem:[%s1943_s4 + $0x60] sm:$0xff]  ;;  %v1701_v35 = vld [vmem:[%s1943_s4 + $0x30] sm:$0xff]  ;;  %v1692_v36 = vld [vmem:[%s1943_s4 + $0x68] sm:$0xff] }
  0x18   : > { %v1683_v33 = vld [vmem:[%s1943_s4 + $0x20] sm:$0xff]  ;;  %v1684_v37 = vld [vmem:[%s1943_s4 + $0x28] sm:$0xff]  ;;  %v1718_v38 = vld [vmem:[%s1943_s4 + $0x38] sm:$0xff] }
  0x19   : > { %1460 = vmatmul.msk.bf16.vlgmr.msra.gmra.mxu0 %vm411_vm1, %v1696_v15  ;;  %1472 = vmatmul.msk.bf16.vlgmr.msra.gmra.mxu3 %vm411_vm1, %v1708_v16  ;;  %v1702_v39 = vld [vmem:[%s1943_s4 + $0x38] sm:$0xff]  ;;  %v1693_v40 = vld [vmem:[%s1943_s4 + $0x70] sm:$0xff]  ;;  %v1719_v42 = vld [vmem:[%s1943_s4 + $0x40] sm:$0xff] }
  0x1a   : > { %1827 = vmatpush.bf16.msrb.mxu3 %v691_v10  ;;  %1544 = vmatmul.msk.bf16.vlgmr.msra.gmra.mxu1 %vm411_vm1, %v1679_v17  ;;  %v1685_v41 = vld [vmem:[%s1943_s4 + $0x30] sm:$0xff]  ;;  %v1703_v43 = vld [vmem:[%s1943_s4 + $0x40] sm:$0xff]  ;;  %v1694_v44 = vld [vmem:[%s1943_s4 + $0x78] sm:$0xff] }
  0x1b   : > { %1660 = vmatmul.msk.bf16.vlgmr.msra.gmra.mxu2 %vm411_vm1, %v1713_v18  ;;  %v1686_v45 = vld [vmem:[%s1943_s4 + $0x38] sm:$0xff]  ;;  %v1720_v46 = vld [vmem:[%s1943_s4 + $0x48] sm:$0xff]  ;;  %v1725_v48 = vld [vmem:[%s1943_s4 + $0x70] sm:$0xff] }
  0x1c   : > { %v1704_v47 = vld [vmem:[%s1943_s4 + $0x48] sm:$0xff]  ;;  %v1687_v50 = vld [vmem:[%s1943_s4 + $0x40] sm:$0xff]  ;;  %v1721_v51 = vld [vmem:[%s1943_s4 + $0x50] sm:$0xff] }
  0x1d   : > { %v1705_v63 = vld [vmem:[%s1943_s4 + $0x50] sm:$0xff]  ;;  %v1726_v0 = vld [vmem:[%s1943_s4 + $0x78] sm:$0xff]  ;;  %v1688_v4 = vld [vmem:[%s1943_s4 + $0x48] sm:$0xff] }
  0x1e   : > { %1828 = vmatpush.bf16.msrb.mxu3 %v1695_v13  ;;  %v1722_v5 = vld [vmem:[%s1943_s4 + $0x58] sm:$0xff] }
  0x22   : > { %1829 = vmatpush.bf16.msra.mxu3 %v959_v11 }
  0x26   : > { %1830 = vmatpush.bf16.msra.mxu3 %v1729_v14 }
  0x29   : > { %1461 = vmatmul.msk.bf16.gmra.mxu0 %vm411_vm1, %v1697_v19  ;;  %1473 = vmatmul.msk.bf16.gmra.mxu3 %vm411_vm1, %v1709_v20  ;;  %v1706_v20 = vld [vmem:[%s1943_s4 + $0x58] sm:$0xff] }
  0x2a   : > { %1545 = vmatmul.msk.bf16.gmra.mxu1 %vm411_vm1, %v1680_v21  ;;  %v1727_v21 = vld [vmem:[%s1943_s4 + $0x80] sm:$0xff] }
  0x2b   : > { %1661 = vmatmul.msk.bf16.gmra.mxu2 %vm411_vm1, %v1714_v22 }
  0x39   : > { %1462 = vmatmul.msk.bf16.gmra.mxu0 %vm411_vm1, %v1698_v23  ;;  %1474 = vmatmul.msk.bf16.gmra.mxu3 %vm411_vm1, %v1710_v24 }
  0x3a   : > { %1546 = vmatmul.msk.bf16.gmra.mxu1 %vm411_vm1, %v1681_v25  ;;  %v1689_v25 = vld [vmem:[%s1943_s4 + $0x50] sm:$0xff] }
  0x3b   : > { %1662 = vmatmul.msk.bf16.gmra.mxu2 %vm411_vm1, %v1715_v26  ;;  %v1723_v26 = vld [vmem:[%s1943_s4 + $0x60] sm:$0xff] }
  0x49   : > { %1463 = vmatmul.msk.bf16.gmra.mxu0 %vm411_vm1, %v1699_v27  ;;  %1475 = vmatmul.msk.bf16.gmra.mxu3 %vm411_vm1, %v1711_v28 }
  0x4a   : > { %1547 = vmatmul.msk.bf16.gmra.mxu1 %vm411_vm1, %v1682_v29 }
  0x4b   : > { %1663 = vmatmul.msk.bf16.gmra.mxu2 %vm411_vm1, %v1716_v30 }
  0x59   : > { %1464 = vmatmul.msk.bf16.gmra.mxu0 %vm411_vm1, %v1700_v31  ;;  %1556 = vmatmul.msk.bf16.vlgmr.msrb.gmra.mxu3 %vm411_vm1, %v1691_v32 }
  0x5a   : > { %1548 = vmatmul.msk.bf16.gmra.mxu1 %vm411_vm1, %v1683_v33 }
  0x5b   : > { %1664 = vmatmul.msk.bf16.gmra.mxu2 %vm411_vm1, %v1717_v34 }
  0x69   : > { %1465 = vmatmul.msk.bf16.gmra.mxu0 %vm411_vm1, %v1701_v35  ;;  %1557 = vmatmul.msk.bf16.gmra.mxu3 %vm411_vm1, %v1692_v36 }
  0x6a   : > { %1549 = vmatmul.msk.bf16.gmra.mxu1 %vm411_vm1, %v1684_v37 }
  0x6b   : > { %1665 = vmatmul.msk.bf16.gmra.mxu2 %vm411_vm1, %v1718_v38 }
  0x79   : > { %1466 = vmatmul.msk.bf16.gmra.mxu0 %vm411_vm1, %v1702_v39  ;;  %1558 = vmatmul.msk.bf16.gmra.mxu3 %vm411_vm1, %v1693_v40 }
  0x7a   : > { %1550 = vmatmul.msk.bf16.gmra.mxu1 %vm411_vm1, %v1685_v41  ;;  %v1707_v41 = vld [vmem:[%s1943_s4 + $0x60] sm:$0xff] }
  0x7b   : > { %1666 = vmatmul.msk.bf16.gmra.mxu2 %vm411_vm1, %v1719_v42  ;;  %v1728_v42 = vld [vmem:[%s1943_s4 + $0x88] sm:$0xff] }
  0x89   : > { %1467 = vmatmul.msk.bf16.gmra.mxu0 %vm411_vm1, %v1703_v43  ;;  %1559 = vmatmul.msk.bf16.gmra.mxu3 %vm411_vm1, %v1694_v44 }
  0x8a   : > { %1551 = vmatmul.msk.bf16.gmra.mxu1 %vm411_vm1, %v1686_v45 }
  0x8b   : > { %1667 = vmatmul.msk.bf16.gmra.mxu2 %vm411_vm1, %v1720_v46  ;;  %v1690_v46 = vld [vmem:[%s1943_s4 + $0x58] sm:$0xff] }
  0x96   : > { %v473_v49 = vpop.f32.mrf.mxu0 }
  0x97   : > { %v702_v52 = vpop.f32.mrf.mxu1 }
  0x98   : > { %v703_v55 = vadd.f32 %v702_v52, %v473_v49 }
  0x99   : > { %1468 = vmatmul.msk.bf16.gmra.mxu0 %vm411_vm1, %v1704_v47  ;;  %1672 = vmatmul.msk.bf16.vlgmr.msra.gmra.mxu3 %vm411_vm1, %v1725_v48  ;;  %v1724_v47 = vld [vmem:[%s1943_s4 + $0x68] sm:$0xff] }
  0x9a   : > { %1552 = vmatmul.msk.bf16.gmra.mxu1 %vm411_vm1, %v1687_v50 }
  0x9b   : > { %1668 = vmatmul.msk.bf16.gmra.mxu2 %vm411_vm1, %v1721_v51 }
  0x9c   : > { %v2017_v53 = vpop.f32.mrf.mxu3 }
  0x9e   : > { %v970_v54 = vpop.f32.mrf.mxu2  ;;  %v475_v56 = vpop.f32.mrf.mxu0 }
  0x9f   : > { %v704_v57 = vpop.f32.mrf.mxu1  ;;  %v1050_v58 = vadd.f32 %v970_v54, %v703_v55 }
  0xa0   : > { %v705_v60 = vadd.f32 %v704_v57, %v475_v56 }
  0xa1   : > { %v1085_v1 = vadd.f32 %v2022_v59, %v1050_v58 }
  0xa3   : > { %v1117_v8 = vmax.f32 %v1085_v1, 0.0 }
  0xa4   : > { %v2024_v61 = vpop.f32.mrf.mxu3 }
  0xa6   : > { %v972_v62 = vpop.f32.mrf.mxu2  ;;  %v478_v3 = vpop.f32.mrf.mxu0 }
  0xa7   : > { %v1051_v2 = vadd.f32 %v972_v62, %v705_v60  ;;  %v707_v6 = vpop.f32.mrf.mxu1 }
  0xa8   : > { %v708_v13 = vadd.f32 %v707_v6, %v478_v3 }
  0xa9   : > { %v1086_v7 = vadd.f32 %v2022_v59, %v1051_v2  ;;  %1469 = vmatmul.msk.bf16.gmra.mxu0 %vm411_vm1, %v1705_v63  ;;  %1673 = vmatmul.msk.bf16.gmra.mxu3 %vm411_vm1, %v1726_v0 }
  0xaa   : > { %1553 = vmatmul.msk.bf16.gmra.mxu1 %vm411_vm1, %v1688_v4 }
  0xab   : > { %v1118_v9 = vmax.f32 %v1086_v7, 0.0  ;;  %1669 = vmatmul.msk.bf16.gmra.mxu2 %vm411_vm1, %v1722_v5 }
  0xac   : > { %v2042_v11 = vpop.f32.mrf.mxu3 }
  0xad   : > { %v1733_v10 = vpack.c.bf16 %v1118_v9, %v1117_v8 }
  0xae   : > { %v975_v12 = vpop.f32.mrf.mxu2  ;;  %v480_v14 = vpop.f32.mrf.mxu0 }
  0xaf   : > { %1734 = vst [vmem:[%s2040_s10] sm:$0xff] %v1733_v10   ;;  %v709_v15 = vpop.f32.mrf.mxu1  ;;  %v1052_v16 = vadd.f32 %v975_v12, %v708_v13 }
  0xb0   : > { %v710_v17 = vadd.f32 %v709_v15, %v480_v14 }
  0xb1   : > { %v1087_v22 = vadd.f32 %v2022_v59, %v1052_v16 }
  0xb3   : > { %v1119_v29 = vmax.f32 %v1087_v22, 0.0 }
  0xb4   : > { %v2045_v18 = vpop.f32.mrf.mxu3 }
  0xb6   : > { %v977_v19 = vpop.f32.mrf.mxu2  ;;  %v483_v24 = vpop.f32.mrf.mxu0 }
  0xb7   : > { %v1053_v23 = vadd.f32 %v977_v19, %v710_v17  ;;  %v712_v27 = vpop.f32.mrf.mxu1 }
  0xb8   : > { %v713_v34 = vadd.f32 %v712_v27, %v483_v24 }
  0xb9   : > { %v1088_v28 = vadd.f32 %v2022_v59, %v1053_v23  ;;  %1470 = vmatmul.msk.bf16.gmra.mxu0 %vm411_vm1, %v1706_v20  ;;  %1674 = vmatmul.msk.bf16.gmra.mxu3 %vm411_vm1, %v1727_v21 }
  0xba   : > { %1554 = vmatmul.msk.bf16.gmra.mxu1 %vm411_vm1, %v1689_v25 }
  0xbb   : > { %v1120_v30 = vmax.f32 %v1088_v28, 0.0  ;;  %1670 = vmatmul.msk.bf16.gmra.mxu2 %vm411_vm1, %v1723_v26 }
  0xbc   : > { %v2057_v32 = vpop.f32.mrf.mxu3 }
  0xbd   : > { %v1738_v31 = vpack.c.bf16 %v1120_v30, %v1119_v29 }
  0xbe   : > { %v980_v33 = vpop.f32.mrf.mxu2  ;;  %v485_v35 = vpop.f32.mrf.mxu0 }
  0xbf   : > { %1810 = vst [vmem:[%s2040_s10 + $0x8] sm:$0xff] %v1738_v31   ;;  %v714_v36 = vpop.f32.mrf.mxu1  ;;  %v1054_v37 = vadd.f32 %v980_v33, %v713_v34 }
  0xc0   : > { %v715_v38 = vadd.f32 %v714_v36, %v485_v35 }
  0xc1   : > { %v1089_v43 = vadd.f32 %v2022_v59, %v1054_v37 }
  0xc3   : > { %v1121_v50 = vmax.f32 %v1089_v43, 0.0 }
  0xc4   : > { %v2060_v39 = vpop.f32.mrf.mxu3 }
  0xc6   : > { %v982_v40 = vpop.f32.mrf.mxu2  ;;  %v488_v45 = vpop.f32.mrf.mxu0 }
  0xc7   : > { %v1055_v44 = vadd.f32 %v982_v40, %v715_v38  ;;  %v717_v48 = vpop.f32.mrf.mxu1 }
  0xc8   : > { %v718_v56 = vadd.f32 %v717_v48, %v488_v45 }
  0xc9   : > { %v1090_v49 = vadd.f32 %v2022_v59, %v1055_v44  ;;  %1471 = vmatmul.msk.bf16.gmra.mxu0 %vm411_vm1, %v1707_v41  ;;  %1675 = vmatmul.msk.bf16.gmra.mxu3 %vm411_vm1, %v1728_v42 }
  0xca   : > { %1555 = vmatmul.msk.bf16.gmra.mxu1 %vm411_vm1, %v1690_v46 }
  0xcb   : > { %v1122_v51 = vmax.f32 %v1090_v49, 0.0  ;;  %1671 = vmatmul.msk.bf16.gmra.mxu2 %vm411_vm1, %v1724_v47 }
  0xcc   : > { %v2072_v54 = vpop.f32.mrf.mxu3 }
  0xcd   : > { %v1743_v52 = vpack.c.bf16 %v1122_v51, %v1121_v50 }
  0xce   : > { %v985_v55 = vpop.f32.mrf.mxu2  ;;  %v490_v57 = vpop.f32.mrf.mxu0 }
  0xcf   : > { %1811 = vst [vmem:[%s2040_s10 + $0x10] sm:$0xff] %v1743_v52   ;;  %v719_v58 = vpop.f32.mrf.mxu1  ;;  %v1056_v60 = vadd.f32 %v985_v55, %v718_v56 }
  0xd0   : > { %v720_v62 = vadd.f32 %v719_v58, %v490_v57 }
  0xd1   : > { %v1091_v1 = vadd.f32 %v2022_v59, %v1056_v60 }
  0xd3   : > { %v1123_v6 = vmax.f32 %v1091_v1, 0.0 }
  0xd4   : > { %v2075_v63 = vpop.f32.mrf.mxu3 }
  0xd6   : > { %v987_v0 = vpop.f32.mrf.mxu2  ;;  %v493_v3 = vpop.f32.mrf.mxu0 }
  0xd7   : > { %v1057_v2 = vadd.f32 %v987_v0, %v720_v62  ;;  %v722_v4 = vpop.f32.mrf.mxu1 }
  0xd8   : > { %v723_v13 = vadd.f32 %v722_v4, %v493_v3 }
  0xd9   : > { %v1092_v5 = vadd.f32 %v2022_v59, %v1057_v2 }
  0xdb   : > { %v1124_v7 = vmax.f32 %v1092_v5, 0.0 }
  0xdc   : > { %v762_v9 = vpop.f32.mrf.mxu3 }
  0xdd   : > { %v1748_v8 = vpack.c.bf16 %v1124_v7, %v1123_v6  ;;  %v2080_v10 = vadd.f32 %v762_v9, %v2017_v53 }
  0xde   : > { %v990_v12 = vpop.f32.mrf.mxu2  ;;  %v495_v14 = vpop.f32.mrf.mxu0 }
  0xdf   : > { %1812 = vst [vmem:[%s2040_s10 + $0x18] sm:$0xff] %v1748_v8   ;;  %v724_v15 = vpop.f32.mrf.mxu1  ;;  %v1058_v16 = vadd.f32 %v990_v12, %v723_v13 }
  0xe0   : > { %v725_v17 = vadd.f32 %v724_v15, %v495_v14 }
  0xe1   : > { %v1093_v21 = vadd.f32 %v2022_v59, %v1058_v16 }
  0xe3   : > { %v1125_v53 = vmax.f32 %v1093_v21, 0.0 }
  0xe4   : > { %v2083_v19 = vpop.f32.mrf.mxu3 }
  0xe6   : > { %v992_v20 = vpop.f32.mrf.mxu2  ;;  %v498_v23 = vpop.f32.mrf.mxu0 }
  0xe7   : > { %v1059_v22 = vadd.f32 %v992_v20, %v725_v17  ;;  %v727_v24 = vpop.f32.mrf.mxu1 }
  0xe8   : > { %v728_v31 = vadd.f32 %v727_v24, %v498_v23 }
  0xe9   : > { %v1094_v25 = vadd.f32 %v2022_v59, %v1059_v22 }
  0xeb   : > { %v1126_v26 = vmax.f32 %v1094_v25, 0.0 }
  0xec   : > { %v767_v28 = vpop.f32.mrf.mxu3 }
  0xed   : > { %v1753_v27 = vpack.c.bf16 %v1126_v26, %v1125_v53  ;;  %v2088_v29 = vadd.f32 %v767_v28, %v2042_v11 }
  0xee   : > { %v995_v30 = vpop.f32.mrf.mxu2  ;;  %v500_v33 = vpop.f32.mrf.mxu0 }
  0xef   : > { %1813 = vst [vmem:[%s2040_s10 + $0x20] sm:$0xff] %v1753_v27   ;;  %v729_v34 = vpop.f32.mrf.mxu1  ;;  %v1060_v35 = vadd.f32 %v995_v30, %v728_v31 }
  0xf0   : > { %v730_v36 = vadd.f32 %v729_v34, %v500_v33  ;;  %v765_v34 = vadd.f32 %v2083_v19, %v2024_v61 }
  0xf1   : > { %v1095_v40 = vadd.f32 %v2022_v59, %v1060_v35 }
  0xf3   : > { %v1127_v11 = vmax.f32 %v1095_v40, 0.0 }
  0xf4   : > { %v2091_v37 = vpop.f32.mrf.mxu3 }
  0xf6   : > { %v997_v38 = vpop.f32.mrf.mxu2  ;;  %v503_v42 = vpop.f32.mrf.mxu0 }
  0xf7   : > { %v1061_v41 = vadd.f32 %v997_v38, %v730_v36  ;;  %v732_v43 = vpop.f32.mrf.mxu1 }
  0xf8   : > { %v733_v50 = vadd.f32 %v732_v43, %v503_v42 }
  0xf9   : > { %v1096_v44 = vadd.f32 %v2022_v59, %v1061_v41 }
  0xfb   : > { %v1128_v45 = vmax.f32 %v1096_v44, 0.0 }
  0xfc   : > { %v772_v47 = vpop.f32.mrf.mxu3 }
  0xfd   : > { %v1758_v46 = vpack.c.bf16 %v1128_v45, %v1127_v11  ;;  %v2096_v48 = vadd.f32 %v772_v47, %v2057_v32 }
  0xfe   : > { %v1000_v49 = vpop.f32.mrf.mxu2  ;;  %v505_v51 = vpop.f32.mrf.mxu0 }
  0xff   : > { %1814 = vst [vmem:[%s2040_s10 + $0x28] sm:$0xff] %v1758_v46   ;;  %v734_v52 = vpop.f32.mrf.mxu1  ;;  %v1062_v55 = vadd.f32 %v1000_v49, %v733_v50 }
 0x100   : > { %v735_v56 = vadd.f32 %v734_v52, %v505_v51 }
 0x101   : > { %v1097_v60 = vadd.f32 %v2022_v59, %v1062_v55 }
 0x103   : > { %v1129_v32 = vmax.f32 %v1097_v60, 0.0 }
 0x104   : > { %v2099_v57 = vpop.f32.mrf.mxu3 }
 0x106   : > { %v1002_v58 = vpop.f32.mrf.mxu2  ;;  %v508_v0 = vpop.f32.mrf.mxu0 }
 0x107   : > { %v1063_v62 = vadd.f32 %v1002_v58, %v735_v56  ;;  %v737_v1 = vpop.f32.mrf.mxu1 }
 0x108   : > { %v738_v8 = vadd.f32 %v737_v1, %v508_v0  ;;  %v770_v0 = vadd.f32 %v2091_v37, %v2045_v18 }
 0x109   : > { %v1098_v2 = vadd.f32 %v2022_v59, %v1063_v62 }
 0x10b   : > { %v1130_v3 = vmax.f32 %v1098_v2, 0.0 }
 0x10c   : > { %v777_v5 = vpop.f32.mrf.mxu3 }
 0x10d   : > { %v1763_v4 = vpack.c.bf16 %v1130_v3, %v1129_v32  ;;  %v2104_v6 = vadd.f32 %v777_v5, %v2072_v54 }
 0x10e   : > { %v1005_v7 = vpop.f32.mrf.mxu2  ;;  %v510_v9 = vpop.f32.mrf.mxu0 }
 0x10f   : > { %1815 = vst [vmem:[%s2040_s10 + $0x30] sm:$0xff] %v1763_v4   ;;  %v739_v12 = vpop.f32.mrf.mxu1  ;;  %v1064_v13 = vadd.f32 %v1005_v7, %v738_v8 }
 0x110   : > { %v740_v14 = vadd.f32 %v739_v12, %v510_v9 }
 0x111   : > { %v1099_v17 = vadd.f32 %v2022_v59, %v1064_v13 }
 0x113   : > { %v1131_v54 = vmax.f32 %v1099_v17, 0.0 }
 0x114   : > { %v2107_v15 = vpop.f32.mrf.mxu3 }
 0x116   : > { %v1007_v16 = vpop.f32.mrf.mxu2  ;;  %v513_v21 = vpop.f32.mrf.mxu0 }
 0x117   : > { %v1065_v20 = vadd.f32 %v1007_v16, %v740_v14  ;;  %v742_v22 = vpop.f32.mrf.mxu1 }
 0x118   : > { %v743_v27 = vadd.f32 %v742_v22, %v513_v21 }
 0x119   : > { %v1100_v23 = vadd.f32 %v2022_v59, %v1065_v20 }
 0x11b   : > { %v1132_v24 = vmax.f32 %v1100_v23, 0.0 }
 0x11c   : > { %v1030_v53 = vpop.f32.mrf.mxu3 }
 0x11d   : > { %v1768_v25 = vpack.c.bf16 %v1132_v24, %v1131_v54  ;;  %v1074_v31 = vadd.f32 %v1030_v53, %v2080_v10  ;;  %v775_v53 = vadd.f32 %v2099_v57, %v2060_v39 }
 0x11e   : > { %v1010_v26 = vpop.f32.mrf.mxu2  ;;  %v515_v28 = vpop.f32.mrf.mxu0 }
 0x11f   : > { %1816 = vst [vmem:[%s2040_s10 + $0x38] sm:$0xff] %v1768_v25   ;;  %v744_v30 = vpop.f32.mrf.mxu1  ;;  %v1066_v33 = vadd.f32 %v1010_v26, %v743_v27  ;;  %v1109_v38 = vadd.f32 %v2022_v59, %v1074_v31 }
 0x120   : > { %v745_v35 = vadd.f32 %v744_v30, %v515_v28 }
 0x121   : > { %v1101_v42 = vadd.f32 %v2022_v59, %v1066_v33  ;;  %v1141_v46 = vmax.f32 %v1109_v38, 0.0 }
 0x123   : > { %v1133_v61 = vmax.f32 %v1101_v42, 0.0 }
 0x124   : > { %v1032_v36 = vpop.f32.mrf.mxu3 }
 0x125   : > { %v1075_v41 = vadd.f32 %v1032_v36, %v765_v34 }
 0x126   : > { %v1012_v40 = vpop.f32.mrf.mxu2  ;;  %v518_v44 = vpop.f32.mrf.mxu0 }
 0x127   : > { %v1067_v43 = vadd.f32 %v1012_v40, %v745_v35  ;;  %v1110_v11 = vadd.f32 %v2022_v59, %v1075_v41  ;;  %v747_v45 = vpop.f32.mrf.mxu1 }
 0x128   : > { %v748_v55 = vadd.f32 %v747_v45, %v518_v44 }
 0x129   : > { %v1102_v10 = vadd.f32 %v2022_v59, %v1067_v43  ;;  %v1142_v47 = vmax.f32 %v1110_v11, 0.0 }
 0x12b   : > { %v1134_v19 = vmax.f32 %v1102_v10, 0.0  ;;  %v1793_v49 = vpack.c.bf16 %v1142_v47, %v1141_v46 }
 0x12c   : > { %v1035_v51 = vpop.f32.mrf.mxu3 }
 0x12d   : > { %v1773_v50 = vpack.c.bf16 %v1134_v19, %v1133_v61  ;;  %1821 = vst [vmem:[%s2040_s10 + $0x60] sm:$0xff] %v1793_v49   ;;  %v1076_v60 = vadd.f32 %v1035_v51, %v2088_v29  ;;  %v780_v19 = vadd.f32 %v2107_v15, %v2075_v63 }
 0x12e   : > { %v1015_v52 = vpop.f32.mrf.mxu2  ;;  %v520_v56 = vpop.f32.mrf.mxu0 }
 0x12f   : > { %1817 = vst [vmem:[%s2040_s10 + $0x40] sm:$0xff] %v1773_v50   ;;  %v749_v58 = vpop.f32.mrf.mxu1  ;;  %v1068_v62 = vadd.f32 %v1015_v52, %v748_v55  ;;  %v1111_v32 = vadd.f32 %v2022_v59, %v1076_v60 }
 0x130   : > { %v750_v1 = vadd.f32 %v749_v58, %v520_v56 }
 0x131   : > { %v1103_v5 = vadd.f32 %v2022_v59, %v1068_v62  ;;  %v1143_v13 = vmax.f32 %v1111_v32, 0.0 }
 0x133   : > { %v1135_v18 = vmax.f32 %v1103_v5, 0.0 }
 0x134   : > { %v1037_v2 = vpop.f32.mrf.mxu3 }
 0x135   : > { %v1077_v4 = vadd.f32 %v1037_v2, %v770_v0 }
 0x136   : > { %v1017_v3 = vpop.f32.mrf.mxu2  ;;  %v523_v8 = vpop.f32.mrf.mxu0 }
 0x137   : > { %v1069_v7 = vadd.f32 %v1017_v3, %v750_v1  ;;  %v1112_v9 = vadd.f32 %v2022_v59, %v1077_v4  ;;  %v752_v12 = vpop.f32.mrf.mxu1 }
 0x138   : > { %v753_v22 = vadd.f32 %v752_v12, %v523_v8 }
 0x139   : > { %v1104_v29 = vadd.f32 %v2022_v59, %v1069_v7  ;;  %v1144_v14 = vmax.f32 %v1112_v9, 0.0 }
 0x13b   : > { %v1136_v37 = vmax.f32 %v1104_v29, 0.0  ;;  %v1798_v16 = vpack.c.bf16 %v1144_v14, %v1143_v13 }
 0x13c   : > { %v1040_v20 = vpop.f32.mrf.mxu3 }
 0x13d   : > { %v1778_v17 = vpack.c.bf16 %v1136_v37, %v1135_v18  ;;  %1822 = vst [vmem:[%s2040_s10 + $0x68] sm:$0xff] %v1798_v16   ;;  %v1078_v24 = vadd.f32 %v1040_v20, %v2096_v48 }
 0x13e   : > { %v1020_v21 = vpop.f32.mrf.mxu2  ;;  %v525_v23 = vpop.f32.mrf.mxu0 }
 0x13f   : > { %1818 = vst [vmem:[%s2040_s10 + $0x48] sm:$0xff] %v1778_v17   ;;  %v754_v54 = vpop.f32.mrf.mxu1  ;;  %v1070_v25 = vadd.f32 %v1020_v21, %v753_v22  ;;  %v1113_v28 = vadd.f32 %v2022_v59, %v1078_v24 }
 0x140   : > { %v755_v26 = vadd.f32 %v754_v54, %v525_v23 }
 0x141   : > { %v1105_v33 = vadd.f32 %v2022_v59, %v1070_v25  ;;  %v1145_v40 = vmax.f32 %v1113_v28, 0.0 }
 0x143   : > { %v1137_v39 = vmax.f32 %v1105_v33, 0.0 }
 0x144   : > { %v1042_v27 = vpop.f32.mrf.mxu3 }
 0x145   : > { %v1079_v31 = vadd.f32 %v1042_v27, %v775_v53 }
 0x146   : > { %v1022_v30 = vpop.f32.mrf.mxu2  ;;  %v528_v36 = vpop.f32.mrf.mxu0 }
 0x147   : > { %v1071_v34 = vadd.f32 %v1022_v30, %v755_v26  ;;  %v1114_v35 = vadd.f32 %v2022_v59, %v1079_v31  ;;  %v757_v38 = vpop.f32.mrf.mxu1 }
 0x148   : > { %v758_v45 = vadd.f32 %v757_v38, %v528_v36 }
 0x149   : > { %v1106_v48 = vadd.f32 %v2022_v59, %v1071_v34  ;;  %v1146_v41 = vmax.f32 %v1114_v35, 0.0 }
 0x14b   : > { %v1138_v57 = vmax.f32 %v1106_v48, 0.0  ;;  %v1803_v42 = vpack.c.bf16 %v1146_v41, %v1145_v40 }
 0x14c   : > { %v1045_v44 = vpop.f32.mrf.mxu3 }
 0x14d   : > { %v1783_v43 = vpack.c.bf16 %v1138_v57, %v1137_v39  ;;  %1823 = vst [vmem:[%s2040_s10 + $0x70] sm:$0xff] %v1803_v42   ;;  %v1080_v10 = vadd.f32 %v1045_v44, %v2104_v6 }
 0x14e   : > { %v1025_v11 = vpop.f32.mrf.mxu2  ;;  %v530_v46 = vpop.f32.mrf.mxu0 }
 0x14f   : > { %1819 = vst [vmem:[%s2040_s10 + $0x50] sm:$0xff] %v1783_v43   ;;  %v759_v47 = vpop.f32.mrf.mxu1  ;;  %v1072_v61 = vadd.f32 %v1025_v11, %v758_v45  ;;  %v1115_v51 = vadd.f32 %v2022_v59, %v1080_v10 }
 0x150   : > { %v760_v49 = vadd.f32 %v759_v47, %v530_v46 }
 0x151   : > { %v1107_v56 = vadd.f32 %v2022_v59, %v1072_v61  ;;  %v1147_v62 = vmax.f32 %v1115_v51, 0.0 }
 0x153   : > { %v1139_v1 = vmax.f32 %v1107_v56, 0.0 }
 0x154   : > { %v1047_v50 = vpop.f32.mrf.mxu3 }
 0x155   : > { %v1081_v55 = vadd.f32 %v1047_v50, %v780_v19 }
 0x156   : > { %v1027_v52 = vpop.f32.mrf.mxu2 }
 0x157   : > { %v1073_v58 = vadd.f32 %v1027_v52, %v760_v49  ;;  %v1116_v60 = vadd.f32 %v2022_v59, %v1081_v55 }
 0x159   : > { %v1108_v6 = vadd.f32 %v2022_v59, %v1073_v58  ;;  %v1148_v0 = vmax.f32 %v1116_v60, 0.0 }
 0x15b   : > { %v1140_v2 = vmax.f32 %v1108_v6, 0.0  ;;  %v1808_v63 = vpack.c.bf16 %v1148_v0, %v1147_v62 }
 0x15d   : > { %v1788_v15 = vpack.c.bf16 %v1140_v2, %v1139_v1  ;;  %1824 = vst [vmem:[%s2040_s10 + $0x78] sm:$0xff] %v1808_v63  }
 0x15f   : > { %1820 = vst [vmem:[%s2040_s10 + $0x58] sm:$0xff] %v1788_v15  }
 0x160 PF: > { %s13_s14 = sadd.s32 1, %s1879_s14   ;;  %s2161_s12 = smov %s1875_s13 }
 0x161   : > { %p10_p5 = scmp.ge.s32.totalorder %s13_s14, 4   ;;  %s2162_s13 = smov %s2164_s15 }
 0x163   :  { %12 = sbr.rel (!%p10_p5) target bundleno = 2 (0x2), region = 71 }

</bundles_post_ra>
